<compile_context>
chip_gen: v6e
topology: v6e:2x2x1
jax: 0.10.0
libtpu: 0.0.40
codegen_flags: <defaults>
</compile_context>

<pallas_src>
import functools

import jax
import jax.numpy as jnp
from jax.experimental import pallas as pl
from jax.experimental.pallas import tpu as pltpu


def _round_up(x, m):
    return ((x + m - 1) // m) * m


def _cdiv(a, b):
    return (a + b - 1) // b


def _causal_conv_kernel(x_ref, hist_ref, wa_ref, wb_ref, ba_ref, bb_ref,
                        ws_ref, bs_ref, wo_ref, bo_ref,
                        xout_ref, sout_ref, *, kernel_size, dilation, pad):
    """One (batch, time-tile) step.  x_ref: [C, t_blk], hist_ref: [C, max(pad,1)]."""
    x = x_ref[...]                                   # [C, t_blk] io dtype
    t_blk = x.shape[-1]

    if pad > 0:
        # causal window: [history | current tile]  -> [C, pad + t_blk]
        xw = jnp.concatenate([hist_ref[...], x], axis=-1)
    else:
        xw = x

    # K dilated taps, fused gate halves kept as two aligned f32 accumulators.
    a_acc = jnp.zeros(x.shape, jnp.float32)
    b_acc = jnp.zeros(x.shape, jnp.float32)
    for k in range(kernel_size):
        off = k * dilation                           # static
        tap = x if off == pad else xw[:, off:off + t_blk]
        a_acc = a_acc + jnp.dot(wa_ref[k], tap, preferred_element_type=jnp.float32)
        b_acc = b_acc + jnp.dot(wb_ref[k], tap, preferred_element_type=jnp.float32)

    a = a_acc + ba_ref[...]
    b = b_acc + bb_ref[...]
    z = jnp.tanh(a) * jax.nn.sigmoid(b)              # f32 gate math (EUP), [C, t_blk]

    # 1x1 convs == channel matmuls, f32 accumulation.
    s = jnp.dot(ws_ref[...], z.astype(ws_ref.dtype),
                preferred_element_type=jnp.float32) + bs_ref[...]
    out = jnp.dot(wo_ref[...], s.astype(wo_ref.dtype),
                  preferred_element_type=jnp.float32) + bo_ref[...]
    out = out + x                                    # residual add (same tile)

    xout_ref[...] = out.astype(xout_ref.dtype)
    sout_ref[...] = s.astype(sout_ref.dtype)


def _vmem_capacity_bytes():
    try:
        return int(pltpu.get_tpu_info().vmem_capacity_bytes)
    except Exception:
        return 64 * 1024 * 1024          # v7x per-TC (smallest of current gens)


def _pick_time_tile(T, C, B, itemsize, vmem_cap):
    """Largest 128-multiple lane tile whose working set fits the VMEM budget."""
    Tp0 = _round_up(max(T, 1), 128)
    # rough per-lane-column bytes: (x + 2 outputs) double-buffered in io dtype,
    # plus the causal window copy and ~6 f32 [C, t] temporaries in the body.
    per_col = C * (7 * itemsize + 6 * 4)
    budget = int(vmem_cap * 0.6)                     # headroom (v7x: 64 MiB/TC)
    t_budget = max(budget // max(per_col, 1), 128)
    t_blk = min(Tp0, 16384, (t_budget // 128) * 128)
    t_blk = max(t_blk, 128)
    if B == 1 and Tp0 >= 256:
        # guarantee >=2 grid steps so both v7x TensorCores get work
        t_blk = min(t_blk, _round_up(_cdiv(Tp0, 2), 128))
    n_tiles = _cdiv(Tp0, t_blk)
    return t_blk, n_tiles, n_tiles * t_blk


def causal_conv(x, params, *, kernel_size, dilation, io_dtype=None):
    """x: [B, residual_channels, T].  Returns (x_out, s) like the nn.Module."""
    wconv, bconv, wskip, bskip, wout, bout = params
    B, C, T = x.shape
    G = wconv.shape[0]
    assert G == 2 * C, "gated_channels must equal 2 * residual_channels"
    pad = (kernel_size - 1) * dilation
    halo = max(pad, 1)

    if io_dtype is None:
        io_dtype = x.dtype
    io_dtype = jnp.dtype(io_dtype)
    itemsize = io_dtype.itemsize

    vmem_cap = _vmem_capacity_bytes()
    t_blk, n_tiles, Tp = _pick_time_tile(T, C, B, itemsize, vmem_cap)

    # --- wrapper-side prep: native layout, no transposes, no im2col slab ---
    x_io = x.astype(io_dtype)
    x_p = x_io if Tp == T else jnp.pad(x_io, ((0, 0), (0, 0), (0, Tp - T)))

    if pad > 0:
        # per-tile causal history halo: hist[b, j] = x[b, :, j*t_blk-pad : j*t_blk]
        # (zeros before t=0).  Small gather: n_tiles*pad columns total.
        idx = (jnp.arange(n_tiles)[:, None] * t_blk - pad
               + jnp.arange(pad)[None, :])                       # may be negative (j=0)
        valid = idx >= 0
        hist = jnp.take(x_p, jnp.maximum(idx, 0).reshape(-1), axis=2)
        hist = hist.reshape(B, C, n_tiles, pad)
        hist = jnp.where(valid.reshape(1, 1, n_tiles, pad), hist, 0)
        hist = hist.transpose(0, 2, 1, 3)                        # [B, n_tiles, C, pad]
    else:
        hist = jnp.zeros((B, n_tiles, C, halo), io_dtype)

    # Gate-aligned weight split done host-side: wa/wb are [K, C, C].
    wa = jnp.transpose(wconv[:C], (2, 0, 1)).astype(io_dtype)
    wb = jnp.transpose(wconv[C:], (2, 0, 1)).astype(io_dtype)
    ba = bconv[:C].reshape(C, 1).astype(io_dtype)
    bb = bconv[C:].reshape(C, 1).astype(io_dtype)
    ws = wskip.astype(io_dtype)
    bs = bskip.reshape(C, 1).astype(io_dtype)
    wo = wout.astype(io_dtype)
    bo = bout.reshape(C, 1).astype(io_dtype)

    kernel = functools.partial(_causal_conv_kernel, kernel_size=kernel_size,
                               dilation=dilation, pad=pad)

    x_spec = pl.BlockSpec((pl.Squeezed(), C, t_blk), lambda b, j: (b, 0, j))
    hist_spec = pl.BlockSpec((pl.Squeezed(), pl.Squeezed(), C, halo),
                             lambda b, j: (b, j, 0, 0))
    w3_spec = pl.BlockSpec((kernel_size, C, C), lambda b, j: (0, 0, 0))
    w2_spec = pl.BlockSpec((C, C), lambda b, j: (0, 0))
    bias_spec = pl.BlockSpec((C, 1), lambda b, j: (0, 0))
    out_spec = pl.BlockSpec((pl.Squeezed(), C, t_blk), lambda b, j: (b, 0, j))

    N = B * T
    cost = pl.CostEstimate(
        flops=int(2 * N * C * C * (2 * kernel_size + 2)),
        transcendentals=int(2 * C * N),
        bytes_accessed=int(itemsize * (3 * C * N + B * n_tiles * C * halo
                                       + (2 * kernel_size + 2) * C * C + 4 * C)),
    )

    x2, s2 = pl.pallas_call(
        kernel,
        out_shape=(jax.ShapeDtypeStruct((B, C, Tp), io_dtype),
                   jax.ShapeDtypeStruct((B, C, Tp), io_dtype)),
        grid=(B, n_tiles),
        in_specs=[x_spec, hist_spec, w3_spec, w3_spec, bias_spec, bias_spec,
                  w2_spec, bias_spec, w2_spec, bias_spec],
        out_specs=(out_spec, out_spec),
        compiler_params=pltpu.CompilerParams(
            dimension_semantics=("parallel", "parallel"),
            vmem_limit_bytes=int(min(vmem_cap * 0.9, 110 * 1024 * 1024))),
        cost_estimate=cost,
    )(x_p, hist, wa, wb, ba, bb, ws, bs, wo, bo)

    return x2[:, :, :T], s2[:, :, :T]


def _reference(x, params, *, kernel_size, dilation):
    """Pure-jnp reference matching the PyTorch forward semantics."""
    wconv, bconv, wskip, bskip, wout, bout = params
    B, C, T = x.shape
    pad = (kernel_size - 1) * dilation
    xpad = jnp.pad(x, ((0, 0), (0, 0), (pad, 0)))
    y = bconv[None, :, None]
    for k in range(kernel_size):
        y = y + jnp.einsum('oi,bit->bot', wconv[:, :, k],
                           xpad[:, :, k * dilation: k * dilation + T])
    a, b = y[:, :C, :], y[:, C:, :]
    z = jnp.tanh(a) * jax.nn.sigmoid(b)
    s = jnp.einsum('oi,bit->bot', wskip, z) + bskip[None, :, None]
    out = jnp.einsum('oi,bit->bot', wout, s) + bout[None, :, None] + x
    return out, s


if __name__ == "__main__":
    # module config: residual_channels=4, gated_channels=8 (=2*residual, as the
    # forward's `a, b = torch.split(...)` requires), kernel_size=2, dilation=2
    B, R, T = 2, 4, 16
    K, D = 2, 2
    G = 2 * R

    key = jax.random.PRNGKey(0)
    ks = jax.random.split(key, 7)
    x = jax.random.normal(ks[0], (B, R, T), jnp.float32)
    params = (
        jax.random.normal(ks[1], (G, R, K), jnp.float32) * 0.3,   # conv.weight
        jax.random.normal(ks[2], (G,), jnp.float32) * 0.1,        # conv.bias
        jax.random.normal(ks[3], (R, R), jnp.float32) * 0.3,      # skip_conv.weight (k=1 squeezed)
        jax.random.normal(ks[4], (R,), jnp.float32) * 0.1,        # skip_conv.bias
        jax.random.normal(ks[5], (R, R), jnp.float32) * 0.3,      # out_conv.weight (k=1 squeezed)
        jax.random.normal(ks[6], (R,), jnp.float32) * 0.1,        # out_conv.bias
    )

    x_ref, s_ref = _reference(x, params, kernel_size=K, dilation=D)

    # f32 I/O: tight check against the reference.
    x_out, s_out = causal_conv(x, params, kernel_size=K, dilation=D)
    jax.block_until_ready((x_out, s_out))
    assert x_out.shape == (B, R, T) and s_out.shape == (B, R, T)
    assert jnp.allclose(x_out, x_ref, atol=1e-4, rtol=1e-4), \
        float(jnp.max(jnp.abs(x_out - x_ref)))
    assert jnp.allclose(s_out, s_ref, atol=1e-4, rtol=1e-4), \
        float(jnp.max(jnp.abs(s_out - s_ref)))

    # bf16 I/O (halved HBM bytes): loose check, f32 accumulation inside.
    xb, sb = causal_conv(x, params, kernel_size=K, dilation=D,
                         io_dtype=jnp.bfloat16)
    jax.block_until_ready((xb, sb))
    assert jnp.allclose(xb.astype(jnp.float32), x_ref, atol=0.1, rtol=0.1), \
        float(jnp.max(jnp.abs(xb.astype(jnp.float32) - x_ref)))
    assert jnp.allclose(sb.astype(jnp.float32), s_ref, atol=0.1, rtol=0.1), \
        float(jnp.max(jnp.abs(sb.astype(jnp.float32) - s_ref)))

    print("KERNEL_OK")
</pallas_src>

<mosaic_0001>
module attributes {stable_mosaic.version = 11 : i64} {
  func.func @_causal_conv_kernel(%arg0: i32, %arg1: i32, %arg2: memref<1x4x128xf32, #tpu.memory_space<vmem>>, %arg3: memref<1x1x4x2xf32, #tpu.memory_space<vmem>>, %arg4: memref<2x4x4xf32, #tpu.memory_space<vmem>>, %arg5: memref<2x4x4xf32, #tpu.memory_space<vmem>>, %arg6: memref<4x1xf32, #tpu.memory_space<vmem>>, %arg7: memref<4x1xf32, #tpu.memory_space<vmem>>, %arg8: memref<4x4xf32, #tpu.memory_space<vmem>>, %arg9: memref<4x1xf32, #tpu.memory_space<vmem>>, %arg10: memref<4x4xf32, #tpu.memory_space<vmem>>, %arg11: memref<4x1xf32, #tpu.memory_space<vmem>>, %arg12: memref<1x4x128xf32, #tpu.memory_space<vmem>>, %arg13: memref<1x4x128xf32, #tpu.memory_space<vmem>>) attributes {dimension_semantics = [#tpu.dimension_semantics<parallel>, #tpu.dimension_semantics<parallel>], iteration_bounds = array<i64: 2, 1>, scalar_prefetch = 0 : i64, scratch_operands = 0 : i64, tpu.core_type = #tpu.core_type<tc>, window_params = [{transform_indices = @transform_0, window_bounds = array<i64: 1, 4, 128>}, {transform_indices = @transform_1, window_bounds = array<i64: 1, 1, 4, 2>}, {pipeline_mode = #tpu.pipeline_mode<synchronous>, transform_indices = @transform_2, window_bounds = array<i64: 2, 4, 4>}, {pipeline_mode = #tpu.pipeline_mode<synchronous>, transform_indices = @transform_3, window_bounds = array<i64: 2, 4, 4>}, {pipeline_mode = #tpu.pipeline_mode<synchronous>, transform_indices = @transform_4, window_bounds = array<i64: 4, 1>}, {pipeline_mode = #tpu.pipeline_mode<synchronous>, transform_indices = @transform_5, window_bounds = array<i64: 4, 1>}, {pipeline_mode = #tpu.pipeline_mode<synchronous>, transform_indices = @transform_6, window_bounds = array<i64: 4, 4>}, {pipeline_mode = #tpu.pipeline_mode<synchronous>, transform_indices = @transform_7, window_bounds = array<i64: 4, 1>}, {pipeline_mode = #tpu.pipeline_mode<synchronous>, transform_indices = @transform_8, window_bounds = array<i64: 4, 4>}, {pipeline_mode = #tpu.pipeline_mode<synchronous>, transform_indices = @transform_9, window_bounds = array<i64: 4, 1>}, {transform_indices = @transform_10, window_bounds = array<i64: 1, 4, 128>}, {transform_indices = @transform_11, window_bounds = array<i64: 1, 4, 128>}]} {
    %c0 = arith.constant 0 : index
    %c0_0 = arith.constant 0 : index
    %c0_1 = arith.constant 0 : index
    %0 = vector.load %arg2[%c0, %c0_0, %c0_1] : memref<1x4x128xf32, #tpu.memory_space<vmem>>, vector<1x4x128xf32>
    %1 = vector.shape_cast %0 : vector<1x4x128xf32> to vector<4x128xf32>
    %c0_2 = arith.constant 0 : index
    %c0_3 = arith.constant 0 : index
    %c0_4 = arith.constant 0 : index
    %c0_5 = arith.constant 0 : index
    %2 = vector.load %arg3[%c0_2, %c0_3, %c0_4, %c0_5] : memref<1x1x4x2xf32, #tpu.memory_space<vmem>>, vector<1x1x4x2xf32>
    %3 = vector.shape_cast %2 : vector<1x1x4x2xf32> to vector<4x2xf32>
    %4 = tpu.concatenate %3, %1 in 1 : vector<4x2xf32>, vector<4x128xf32> -> vector<4x130xf32>
    %cst = arith.constant 0.000000e+00 : f32
    %5 = vector.broadcast %cst : f32 to vector<4x128xf32>
    %cst_6 = arith.constant 0.000000e+00 : f32
    %6 = vector.broadcast %cst_6 : f32 to vector<4x128xf32>
    %7 = vector.extract_strided_slice %4 {offsets = [0, 0], sizes = [4, 128], strides = [1, 1]} : vector<4x130xf32> to vector<4x128xf32>
    %c0_7 = arith.constant 0 : index
    %c0_8 = arith.constant 0 : index
    %c0_9 = arith.constant 0 : index
    %8 = vector.load %arg4[%c0_7, %c0_8, %c0_9] : memref<2x4x4xf32, #tpu.memory_space<vmem>>, vector<1x4x4xf32>
    %9 = vector.shape_cast %8 : vector<1x4x4xf32> to vector<4x4xf32>
    %cst_10 = arith.constant dense<0.000000e+00> : vector<4x128xf32>
    %10 = tpu.matmul %9, %7, %cst_10 {dimension_numbers = #tpu.dot_dimension_numbers<[1], [0], [0], [1], [0, 0, 1, 1], [], []>} : vector<4x4xf32>, vector<4x128xf32>, vector<4x128xf32> -> vector<4x128xf32>
    %11 = arith.addf %5, %10 : vector<4x128xf32>
    %c0_11 = arith.constant 0 : index
    %c0_12 = arith.constant 0 : index
    %c0_13 = arith.constant 0 : index
    %12 = vector.load %arg5[%c0_11, %c0_12, %c0_13] : memref<2x4x4xf32, #tpu.memory_space<vmem>>, vector<1x4x4xf32>
    %13 = vector.shape_cast %12 : vector<1x4x4xf32> to vector<4x4xf32>
    %cst_14 = arith.constant dense<0.000000e+00> : vector<4x128xf32>
    %14 = tpu.matmul %13, %7, %cst_14 {dimension_numbers = #tpu.dot_dimension_numbers<[1], [0], [0], [1], [0, 0, 1, 1], [], []>} : vector<4x4xf32>, vector<4x128xf32>, vector<4x128xf32> -> vector<4x128xf32>
    %15 = arith.addf %6, %14 : vector<4x128xf32>
    %c1 = arith.constant 1 : index
    %c0_15 = arith.constant 0 : index
    %c0_16 = arith.constant 0 : index
    %16 = vector.load %arg4[%c1, %c0_15, %c0_16] : memref<2x4x4xf32, #tpu.memory_space<vmem>>, vector<1x4x4xf32>
    %17 = vector.shape_cast %16 : vector<1x4x4xf32> to vector<4x4xf32>
    %cst_17 = arith.constant dense<0.000000e+00> : vector<4x128xf32>
    %18 = tpu.matmul %17, %1, %cst_17 {dimension_numbers = #tpu.dot_dimension_numbers<[1], [0], [0], [1], [0, 0, 1, 1], [], []>} : vector<4x4xf32>, vector<4x128xf32>, vector<4x128xf32> -> vector<4x128xf32>
    %19 = arith.addf %11, %18 : vector<4x128xf32>
    %c1_18 = arith.constant 1 : index
    %c0_19 = arith.constant 0 : index
    %c0_20 = arith.constant 0 : index
    %20 = vector.load %arg5[%c1_18, %c0_19, %c0_20] : memref<2x4x4xf32, #tpu.memory_space<vmem>>, vector<1x4x4xf32>
    %21 = vector.shape_cast %20 : vector<1x4x4xf32> to vector<4x4xf32>
    %cst_21 = arith.constant dense<0.000000e+00> : vector<4x128xf32>
    %22 = tpu.matmul %21, %1, %cst_21 {dimension_numbers = #tpu.dot_dimension_numbers<[1], [0], [0], [1], [0, 0, 1, 1], [], []>} : vector<4x4xf32>, vector<4x128xf32>, vector<4x128xf32> -> vector<4x128xf32>
    %23 = arith.addf %15, %22 : vector<4x128xf32>
    %c0_22 = arith.constant 0 : index
    %c0_23 = arith.constant 0 : index
    %24 = vector.load %arg6[%c0_22, %c0_23] : memref<4x1xf32, #tpu.memory_space<vmem>>, vector<4x1xf32>
    %25 = vector.broadcast %24 : vector<4x1xf32> to vector<4x128xf32>
    %26 = arith.addf %19, %25 : vector<4x128xf32>
    %c0_24 = arith.constant 0 : index
    %c0_25 = arith.constant 0 : index
    %27 = vector.load %arg7[%c0_24, %c0_25] : memref<4x1xf32, #tpu.memory_space<vmem>>, vector<4x1xf32>
    %28 = vector.broadcast %27 : vector<4x1xf32> to vector<4x128xf32>
    %29 = arith.addf %23, %28 : vector<4x128xf32>
    %30 = math.tanh %26 : vector<4x128xf32>
    %31 = arith.negf %29 : vector<4x128xf32>
    %32 = math.exp %31 : vector<4x128xf32>
    %cst_26 = arith.constant 1.000000e+00 : f32
    %33 = vector.broadcast %cst_26 : f32 to vector<4x128xf32>
    %34 = arith.addf %33, %32 : vector<4x128xf32>
    %35 = arith.divf %33, %34 : vector<4x128xf32>
    %36 = arith.mulf %30, %35 : vector<4x128xf32>
    %c0_27 = arith.constant 0 : index
    %c0_28 = arith.constant 0 : index
    %37 = vector.load %arg8[%c0_27, %c0_28] : memref<4x4xf32, #tpu.memory_space<vmem>>, vector<4x4xf32>
    %cst_29 = arith.constant dense<0.000000e+00> : vector<4x128xf32>
    %38 = tpu.matmul %37, %36, %cst_29 {dimension_numbers = #tpu.dot_dimension_numbers<[1], [0], [0], [1], [0, 0, 1, 1], [], []>} : vector<4x4xf32>, vector<4x128xf32>, vector<4x128xf32> -> vector<4x128xf32>
    %c0_30 = arith.constant 0 : index
    %c0_31 = arith.constant 0 : index
    %39 = vector.load %arg9[%c0_30, %c0_31] : memref<4x1xf32, #tpu.memory_space<vmem>>, vector<4x1xf32>
    %40 = vector.broadcast %39 : vector<4x1xf32> to vector<4x128xf32>
    %41 = arith.addf %38, %40 : vector<4x128xf32>
    %c0_32 = arith.constant 0 : index
    %c0_33 = arith.constant 0 : index
    %42 = vector.load %arg10[%c0_32, %c0_33] : memref<4x4xf32, #tpu.memory_space<vmem>>, vector<4x4xf32>
    %cst_34 = arith.constant dense<0.000000e+00> : vector<4x128xf32>
    %43 = tpu.matmul %42, %41, %cst_34 {dimension_numbers = #tpu.dot_dimension_numbers<[1], [0], [0], [1], [0, 0, 1, 1], [], []>} : vector<4x4xf32>, vector<4x128xf32>, vector<4x128xf32> -> vector<4x128xf32>
    %c0_35 = arith.constant 0 : index
    %c0_36 = arith.constant 0 : index
    %44 = vector.load %arg11[%c0_35, %c0_36] : memref<4x1xf32, #tpu.memory_space<vmem>>, vector<4x1xf32>
    %45 = vector.broadcast %44 : vector<4x1xf32> to vector<4x128xf32>
    %46 = arith.addf %43, %45 : vector<4x128xf32>
    %47 = arith.addf %46, %1 : vector<4x128xf32>
    %c0_37 = arith.constant 0 : index
    %c0_38 = arith.constant 0 : index
    %c0_39 = arith.constant 0 : index
    %48 = vector.load %arg12[%c0_37, %c0_38, %c0_39] : memref<1x4x128xf32, #tpu.memory_space<vmem>>, vector<1x4x128xf32>
    %49 = vector.shape_cast %48 : vector<1x4x128xf32> to vector<4x128xf32>
    %50 = vector.shape_cast %47 : vector<4x128xf32> to vector<1x4x128xf32>
    tpu.vector_store %arg12[%c0_37, %c0_38, %c0_39], %50 {strides = array<i32>} : memref<1x4x128xf32, #tpu.memory_space<vmem>>, vector<1x4x128xf32>,
    %c0_40 = arith.constant 0 : index
    %c0_41 = arith.constant 0 : index
    %c0_42 = arith.constant 0 : index
    %51 = vector.load %arg13[%c0_40, %c0_41, %c0_42] : memref<1x4x128xf32, #tpu.memory_space<vmem>>, vector<1x4x128xf32>
    %52 = vector.shape_cast %51 : vector<1x4x128xf32> to vector<4x128xf32>
    %53 = vector.shape_cast %41 : vector<4x128xf32> to vector<1x4x128xf32>
    tpu.vector_store %arg13[%c0_40, %c0_41, %c0_42], %53 {strides = array<i32>} : memref<1x4x128xf32, #tpu.memory_space<vmem>>, vector<1x4x128xf32>,
    return
  }
  func.func @transform_0(%arg0: i32, %arg1: i32) -> (i32, i32, i32) {
    %c0_i32 = arith.constant 0 : i32
    %c0_i32_0 = arith.constant 0 : i32
    return %arg0, %c0_i32, %arg1 : i32, i32, i32
  }
  func.func @transform_1(%arg0: i32, %arg1: i32) -> (i32, i32, i32, i32) {
    %c0_i32 = arith.constant 0 : i32
    %c0_i32_0 = arith.constant 0 : i32
    %c0_i32_1 = arith.constant 0 : i32
    return %arg0, %arg1, %c0_i32, %c0_i32_0 : i32, i32, i32, i32
  }
  func.func @transform_2(%arg0: i32, %arg1: i32) -> (i32, i32, i32) {
    %c0_i32 = arith.constant 0 : i32
    %c0_i32_0 = arith.constant 0 : i32
    %c0_i32_1 = arith.constant 0 : i32
    %c0_i32_2 = arith.constant 0 : i32
    return %c0_i32, %c0_i32_0, %c0_i32_1 : i32, i32, i32
  }
  func.func @transform_3(%arg0: i32, %arg1: i32) -> (i32, i32, i32) {
    %c0_i32 = arith.constant 0 : i32
    %c0_i32_0 = arith.constant 0 : i32
    %c0_i32_1 = arith.constant 0 : i32
    %c0_i32_2 = arith.constant 0 : i32
    return %c0_i32, %c0_i32_0, %c0_i32_1 : i32, i32, i32
  }
  func.func @transform_4(%arg0: i32, %arg1: i32) -> (i32, i32) {
    %c0_i32 = arith.constant 0 : i32
    %c0_i32_0 = arith.constant 0 : i32
    %c0_i32_1 = arith.constant 0 : i32
    return %c0_i32, %c0_i32_0 : i32, i32
  }
  func.func @transform_5(%arg0: i32, %arg1: i32) -> (i32, i32) {
    %c0_i32 = arith.constant 0 : i32
    %c0_i32_0 = arith.constant 0 : i32
    %c0_i32_1 = arith.constant 0 : i32
    return %c0_i32, %c0_i32_0 : i32, i32
  }
  func.func @transform_6(%arg0: i32, %arg1: i32) -> (i32, i32) {
    %c0_i32 = arith.constant 0 : i32
    %c0_i32_0 = arith.constant 0 : i32
    %c0_i32_1 = arith.constant 0 : i32
    return %c0_i32, %c0_i32_0 : i32, i32
  }
  func.func @transform_7(%arg0: i32, %arg1: i32) -> (i32, i32) {
    %c0_i32 = arith.constant 0 : i32
    %c0_i32_0 = arith.constant 0 : i32
    %c0_i32_1 = arith.constant 0 : i32
    return %c0_i32, %c0_i32_0 : i32, i32
  }
  func.func @transform_8(%arg0: i32, %arg1: i32) -> (i32, i32) {
    %c0_i32 = arith.constant 0 : i32
    %c0_i32_0 = arith.constant 0 : i32
    %c0_i32_1 = arith.constant 0 : i32
    return %c0_i32, %c0_i32_0 : i32, i32
  }
  func.func @transform_9(%arg0: i32, %arg1: i32) -> (i32, i32) {
    %c0_i32 = arith.constant 0 : i32
    %c0_i32_0 = arith.constant 0 : i32
    %c0_i32_1 = arith.constant 0 : i32
    return %c0_i32, %c0_i32_0 : i32, i32
  }
  func.func @transform_10(%arg0: i32, %arg1: i32) -> (i32, i32, i32) {
    %c0_i32 = arith.constant 0 : i32
    %c0_i32_0 = arith.constant 0 : i32
    return %arg0, %c0_i32, %arg1 : i32, i32, i32
  }
  func.func @transform_11(%arg0: i32, %arg1: i32) -> (i32, i32, i32) {
    %c0_i32 = arith.constant 0 : i32
    %c0_i32_0 = arith.constant 0 : i32
    return %arg0, %c0_i32, %arg1 : i32, i32, i32
  }
}

</mosaic_0001>

<bundles_post_ra>
// kernel: tpu_custom_call.1
= control target key start
LH: loop header
LB: loop body
LE: loop exit
PB: predicated region body
PF: predicated region fallthrough
CT: control target
= control target key end

     0   :  { %s1610_s0 = inlined_call_operand.vmem [shape: f32[2,4,128], index: 0, kind: input, shape index: {}]   ;;  %s1611_s1 = inlined_call_operand.vmem [shape: f32[2,1,4,2], index: 1, kind: input, shape index: {}]   ;;  %s1612_s2 = inlined_call_operand.vmem [shape: f32[2,4,4], index: 2, kind: input, shape index: {}]   ;;  %s1613_s3 = inlined_call_operand.vmem [shape: f32[2,4,4], index: 3, kind: input, shape index: {}]   ;;  %s1614_s4 = inlined_call_operand.vmem [shape: f32[4,1], index: 4, kind: input, shape index: {}]   ;;  %s1615_s5 = inlined_call_operand.vmem [shape: f32[4,1], index: 5, kind: input, shape index: {}]   ;;  %s1616_s6 = inlined_call_operand.vmem [shape: f32[4,4], index: 6, kind: input, shape index: {}]   ;;  %s1617_s7 = inlined_call_operand.vmem [shape: f32[4,1], index: 7, kind: input, shape index: {}]   ;;  %s1618_s8 = inlined_call_operand.vmem [shape: f32[4,4], index: 8, kind: input, shape index: {}]   ;;  %s1619_s9 = inlined_call_operand.vmem [shape: f32[4,1], index: 9, kind: input, shape index: {}]   ;;  %s1620_s10 = inlined_call_operand.hbm [shape: f32[2,4,128], index: 10, kind: output, shape index: {0}]   ;;  %s1621_s11 = inlined_call_operand.hbm [shape: f32[2,4,128], index: 11, kind: output, shape index: {1}]  }
   0x1   :  { %1625 = sst [smem:[#allocation9_spill]] %s1610_s0 }
   0x2   :  { %1626 = sst [smem:[#allocation10_spill]] %s1611_s1 }
   0x3   :  { %1627 = sst [smem:[#allocation11_spill]] %s1612_s2 }
   0x4   :  { %1628 = sst [smem:[#allocation12_spill]] %s1613_s3 }
   0x5   :  { %17 = vsyncpa [#allocation3], 0 }
   0x6   :  { %19 = vsyncpa [#allocation3 + $0x1], 0 }
   0x7   :  { %20 = vsyncpa [#allocation5], 0 }
   0x8   :  { %22 = vsyncpa [#allocation5 + $0x1], 0  ;;  %s1423_s17 = smov 0   ;;  %s1425_s18 = smov 0  }
   0x9   :  { %s1427_s19 = smov 0   ;;  %s1429_s20 = smov 0  }
   0xa   :  { %s1431_s21 = smov 0   ;;  %s1433_s22 = smov 0  }
   0xb LB: > { %s1105_s23 = sadd.s32 4294967295, %s1355_s22   ;;  %s1106_s24 = sadd.s32 4294967294, %s1355_s22   ;;  %s1355_s22 = sphi %s1433_s22, %s28_s22   ;;  %s1351_s21 = sphi %s1431_s21, %s1643_s21   ;;  %s1347_s20 = sphi %s1429_s20, %s1642_s20   ;;  %s1343_s19 = sphi %s1427_s19, %s1641_s19   ;;  %s1339_s18 = sphi %s1425_s18, %s1640_s18   ;;  %s1335_s17 = sphi %s1423_s17, %s1639_s17  }
   0xc   : > { %s40_s25 = sadd.s32 1, %s1351_s21  ;;  %s273_s26 = sadd.s32 1, %s1343_s19 }
   0xd   : > { %p42_p0 = scmp.ge.s32.totalorder %s40_s25, 2  ;;  %p283_p1 = scmp.ne.s32.totalorder %s1343_s19, %s1339_s18 }
   0xe   : > { %p284_p2 = scmp.eq.s32.totalorder %s1105_s23, 1  ;;  %p289_p3 = scmp.ne.s32.totalorder %s1339_s18, %s1335_s17 }
   0xf   : > { %s1645_s25 = smov (%p42_p0, %s40_s25), 0  ;;  %p290_p5 = scmp.eq.s32.totalorder %s1106_s24, 1 }
  0x10   : > { %1629 = sst [smem:[#allocation8_spill]] %s1645_s25  ;;  %p1463_p4 = por %p284_p2, %p283_p1 }
  0x11   : > { %s268_s28 = ssub.s32 %s1351_s21, %s1645_s25  ;;  %p1109_p6 = scmp.ge.s32.totalorder %s1355_s22, 1 }
  0x12   : > { %p271_p7 = scmp.eq.s32.totalorder %s268_s28, 0  ;;  %p1470_p8 = por %p290_p5, %p289_p3 }
  0x13   : > { %p380_p9 = scmp.lt.s32.totalorder %s1355_s22, 3 }
  0x14   : > { %s1476_s30 = scalar_select %p271_p7, %s1343_s19, %s273_s26  }
  0x15   : > { %p381_p10 = pnand %p1109_p6, %p380_p9 }
  0x16   : > { %p434_p11 = scmp.lt.s32.totalorder (!%p381_p10), %s1347_s20, 1  ;;  %s1632_s0 = sld [smem:[#allocation9_spill]] (!%p381_p10) }
  0x17   : > { %384 = sbr.rel (%p381_p10) target bundleno = 792 (0x318), region = 60  ;;  %s1633_s2 = sld [smem:[#allocation11_spill]] (!%p381_p10) }
  0x18   : > { %s1360_s25 = smov (!%p381_p10), 2   ;;  %s1634_s3 = sld [smem:[#allocation12_spill]] (!%p381_p10) }
  0x19   : > { %s1635_s1 = sld [smem:[#allocation10_spill]] (!%p381_p10)  ;;  %s1538_s26 = sand.u32 (!%p381_p10), 1, %s1339_s18  }
  0x1a   : > { %s1623_s28 = sshll.u32 (!%p381_p10), %s1538_s26, 2  ;;  %s1624_s16 = sshll.u32 (!%p381_p10), %s1347_s20, 6 }
  0x1b   : > { %s433_s14 = scalar_lea.vmem (!%p381_p10), [#allocation4], %s1623_s28 }
  0x1c   : > { %v1357_v0 = vmov 0.0   ;;  %vm1358_vm0 = vmmov 0   ;;  %s1481_s12 = scalar_select %p434_p11, %s1347_s20, 1  ;;  %v1359_v1 = vmov 0   ;;  %v761_v2 = vld [vmem:[%s1614_s4] sm:$0xf] }
  0x1d   : > { %1147 = vmatprep.subr.mxu0 %v1357_v0  ;;  %1149 = vmatprep.mubr.msk.f32.mxu0 %vm1358_vm0, %v1357_v0  ;;  %vm464_vm1 = vcmask 1043456   ;;  %v1114_v3 = vld [vmem:[%s1633_s2 + $0x4] sm:$0xf]  ;;  %vm460_vm2 = vcmask 31744   ;;  %v784_v5 = vld [vmem:[%s1617_s7] sm:$0xf] }
  0x1e   : > { %1152 = vmatprep.subr.mxu1 %v1357_v0  ;;  %1154 = vmatprep.mubr.msk.f32.mxu1 %vm1358_vm0, %v1357_v0  ;;  %s1112_s15 = sshll.u32 %s1481_s12, 2  ;;  %v768_v6 = vld [vmem:[%s1615_s5] sm:$0xf]  ;;  %v1119_v7 = vld [vmem:[%s1634_s3 + $0x4] sm:$0xf]  ;;  %vm454_vm3 = vcmask 15360  }
  0x1f   : > { %1242 = vset.pattern.permute.xlu1 %v1359_v1  ;;  %1241 = vset.pattern.permute.xlu0 %v1359_v1  ;;  %s440_s24 = scalar_lea.vmem %s1632_s0, %s1112_s15  ;;  %v867_v8 = vld [vmem:[%s1619_s9] sm:$0xf]  ;;  %s447_s13 = scalar_lea.vmem %s1635_s1, %s1112_s15 }
  0x20   : > { %764 = vperm.xlu1 %1242, %v761_v2   ;;  %v1494_v4 = vld [vmem:[%s440_s24] sm:$0xf]  ;;  %s984_s15 = scalar_lea.hbm %s1621_s11, %s1624_s16  ;;  %s986_s24 = sshll.u32 %s433_s14, 4  ;;  %s987_s24 = int_to_ptr.vmem [resolvable:$true] %s986_s24 }
  0x21   : > { %451 = vrot.lane.b32.xlu0 %v1494_v4, %s1360_s25  ;;  %1148 = vmatpush3.msk.msra.mxu0 %vm464_vm1, %v1494_v4  ;;  %v449_v9 = vld [vmem:[%s447_s13] sm:$0xf]  ;;  %s958_s0 = scalar_lea.sflag [#allocation5], %s1538_s26  ;;  %s1249_s1 = scalar_lea.vmem %s987_s24, 64 }
  0x22   : > { %1150 = vmatmul.mubr.msk.f32.vlgmr.msra.gmra.mxu0 %vm460_vm2, %v1114_v3  ;;  %1157 = vmatprep.subr.mxu0 %v1357_v0  ;;  %v456_v11 = vld [vmem:[%s1633_s2] sm:$0xf]  ;;  %p1250_p12 = scmp.ne.s32.totalorder %s987_s24, %s1249_s1  ;;  %s1361_s12 = smov [#allocation4]  }
  0x23   : > { %1158 = vmatpush3.msk.msra.mxu0 %vm464_vm1, %v1494_v4  ;;  %1159 = vmatprep.mubr.msk.f32.mxu0 %vm1358_vm0, %v1357_v0  ;;  %v457_v13 = vld [vmem:[%s1634_s3] sm:$0xf]  ;;  %s1253_s13 = sshll.u32 %s1361_s12, 4  ;;  %s1254_s13 = int_to_ptr.vmem [resolvable:$false] %s1253_s13 }
  0x24   : > { %787 = vperm.xlu1 %1242, %v784_v5   ;;  %1167 = vmatprep.subr.mxu0 %v1357_v0  ;;  %v783_v34 = vld [vmem:[%s1616_s6] sm:$0xf]  ;;  %p1251_p13 = pnand %p1250_p12, %p1463_p4  ;;  %s1255_s28 = scalar_lea.vmem %s1254_s13, 128 }
  0x25   : > { %771 = vperm.xlu0 %1241, %v768_v6   ;;  %v866_v38 = vld [vmem:[%s1618_s8] sm:$0xf]  ;;  %p1256_p1 = scmp.lt.s32.totalorder %s987_s24, %s1254_s13  ;;  %p1257_p2 = scmp.lt.s32.totalorder %s1255_s28, %s1249_s1 }
  0x26   : > { %1160 = vmatmul.mubr.msk.f32.vlgmr.msra.gmra.mxu0 %vm460_vm2, %v1119_v7  ;;  %p1252_p0 = pneg %p1251_p13 }
  0x27   : > { %1169 = vmatprep.mubr.msk.f32.mxu0 %vm1358_vm0, %v1357_v0  ;;  %p1258_p3 = por %p1257_p2, %p1256_p1 }
  0x28   : > { %870 = vperm.xlu1 %1242, %v867_v8  }
  0x29   : > { %p1259_p5 = pnand %p1258_p3, %p1252_p0 }
  0x93   : > { %v452_v10 = vpop.permute.xlu0 %451 }
  0x94   : > { %v455_v12 = vsel %vm454_vm3, %v449_v9, %v452_v10 }
  0x95   : > { %1153 = vmatpush3.msk.msra.mxu1 %vm464_vm1, %v455_v12 }
  0x96   : > { %1155 = vmatmul.mubr.msk.f32.vlgmr.msra.gmra.mxu1 %vm460_vm2, %v456_v11  ;;  %1162 = vmatprep.subr.mxu1 %v1357_v0 }
  0x97   : > { %1163 = vmatpush3.msk.msra.mxu1 %vm464_vm1, %v455_v12  ;;  %1164 = vmatprep.mubr.msk.f32.mxu1 %vm1358_vm0, %v1357_v0 }
  0x98   : > { %1172 = vmatprep.subr.mxu1 %v1357_v0 }
  0x9a   : > { %1165 = vmatmul.mubr.msk.f32.vlgmr.msra.gmra.mxu1 %vm460_vm2, %v457_v13 }
  0x9b   : > { %1174 = vmatprep.mubr.msk.f32.mxu1 %vm1358_vm0, %v1357_v0  ;;  %v765_v27 = vpop.permute.xlu1 %764 }
  0x9f   : > { %v788_v35 = vpop.permute.xlu1 %787 }
  0xa0   : > { %v772_v21 = vpop.permute.xlu0 %771 }
  0xe2   : > { %v533_v14 = vpop.f32.mrf.mxu0 }
  0xe4   : > { %v1151_v15 = vpop.f32.mrf.mxu0 }
  0xe6   : > { %v684_v16 = vpop.f32.mrf.mxu0 }
  0xe8   : > { %v1161_v17 = vpop.f32.mrf.mxu0 }
 0x156   : > { %v609_v18 = vpop.f32.mrf.mxu1 }
 0x157   : > { %v610_v26 = vadd.f32 %v609_v18, %v533_v14 }
 0x158   : > { %v1156_v19 = vpop.f32.mrf.mxu1 }
 0x159   : > { %v767_v28 = vadd.f32 %v765_v27, %v610_v26 }
 0x15a   : > { %v757_v20 = vpop.f32.mrf.mxu1 }
 0x15b   : > { %v758_v22 = vadd.f32 %v757_v20, %v684_v16 }
 0x15c   : > { %v1166_v23 = vpop.f32.mrf.mxu1 }
 0x15d   : > { %v774_v24 = vadd.f32 %v772_v21, %v758_v22 }
 0x15f   : > { %v1124_v25 = vmul.f32 -1.442695, %v774_v24 }
 0x161   : > { %1243 = vpow2.f32 %v1124_v25 }
 0x162   : > { %1245 = vtanh.f32 %v767_v28 }
 0x16e   : > { %v1244_v29 = vpop.eup %1243 }
 0x16f   : > { %v779_v30 = vadd.f32 1.0, %v1244_v29  ;;  %v1246_v31 = vpop.eup %1245 }
 0x171   : > { %1247 = vrcp.f32 %v779_v30 }
 0x17e   : > { %v1248_v32 = vpop.eup %1247 }
 0x17f   : > { %v782_v33 = vmul.f32 %v1248_v32, %v1246_v31 }
 0x181   : > { %1168 = vmatpush3.msk.msra.mxu0 %vm464_vm1, %v782_v33 }
 0x182   : > { %1170 = vmatmul.mubr.msk.f32.vlgmr.msra.gmra.mxu0 %vm460_vm2, %v783_v34 }
 0x242   : > { %v862_v36 = vpop.f32.mrf.mxu0 }
 0x243   : > { %v863_v37 = vadd.f32 %v862_v36, %v788_v35 }
 0x244   : > { %v1171_v39 = vpop.f32.mrf.mxu0 }
 0x245   : > { %951 = vst [vmem:[%s433_s14] sm:$0xf] %v863_v37  ;;  %1173 = vmatpush3.msk.msra.mxu1 %vm464_vm1, %v863_v37 }
 0x246   : > { %1175 = vmatmul.mubr.msk.f32.vlgmr.msra.gmra.mxu1 %vm460_vm2, %v866_v38 }
 0x247   : > { %1262 = shalt.err (!%p1259_p5)
}
 0x248   : > { %s1263_s2 = scalar_lea.hbm %s984_s15, 64  ;;  %s1267_s23 = scalar_lea.hbm %s1621_s11, 128 }
 0x249   : > { %p1264_p6 = scmp.ne.s32.totalorder %s984_s15, %s1263_s2  ;;  %p1268_p10 = scmp.lt.s32.totalorder %s984_s15, %s1621_s11 }
 0x24a   : > { %p1269_p11 = scmp.lt.s32.totalorder %s1267_s23, %s1263_s2 }
 0x24b   : > { %p1265_p7 = pnand %p1264_p6, %p1463_p4 }
 0x24c   : > { %p1270_p12 = por %p1269_p11, %p1268_p10 }
 0x24d   : > { %p1266_p9 = pneg %p1265_p7 }
 0x24f   : > { %p1271_p13 = pnand %p1270_p12, %p1266_p9 }
 0x251   : > { %1274 = shalt.err (!%p1271_p13)
}
 0x252   : > { %1178 = dma.vmem_to_hbm [thread:$0]  (%p1463_p4), %s987_s24, 64, %s984_s15, %s958_s0   ;;  %v871_v40 = vpop.permute.xlu1 %870 }
 0x253   : > { %s1636_s1 = sshll.u32 %s1538_s26, 2  ;;  %s1637_s2 = sshll.u32 %s1347_s20, 6 }
 0x254   : > { %s426_s28 = scalar_lea.vmem [#allocation2], %s1636_s1  ;;  %s970_s13 = scalar_lea.hbm %s1620_s10, %s1637_s2 }
 0x255   : > { %s972_s12 = sshll.u32 %s426_s28, 4  ;;  %s953_s14 = scalar_lea.sflag [#allocation3], %s1538_s26  ;;  %s973_s12 = int_to_ptr.vmem [resolvable:$true] %s972_s12 }
 0x256   : > { %s1275_s25 = scalar_lea.vmem %s973_s12, 64  ;;  %s1362_s0 = smov [#allocation2]  }
 0x257   : > { %p1276_p0 = scmp.ne.s32.totalorder %s973_s12, %s1275_s25  ;;  %s1279_s15 = sshll.u32 %s1362_s0, 4  ;;  %s1280_s15 = int_to_ptr.vmem [resolvable:$false] %s1279_s15 }
 0x258   : > { %s1281_s24 = scalar_lea.vmem %s1280_s15, 128  ;;  %p1282_p3 = scmp.lt.s32.totalorder %s973_s12, %s1280_s15 }
 0x259   : > { %p1277_p1 = pnand %p1276_p0, %p1463_p4  ;;  %p1283_p5 = scmp.lt.s32.totalorder %s1281_s24, %s1275_s25 }
 0x25b   : > { %p1278_p2 = pneg %p1277_p1  ;;  %p1284_p6 = por %p1283_p5, %p1282_p3 }
 0x25d   : > { %p1285_p7 = pnand %p1284_p6, %p1278_p2 }
 0x306   : > { %v945_v41 = vpop.f32.mrf.mxu1 }
 0x307   : > { %v946_v42 = vadd.f32 %v945_v41, %v871_v40 }
 0x308   : > { %v1176_v43 = vpop.f32.mrf.mxu1 }
 0x309   : > { %v949_v44 = vadd.f32 %v946_v42, %v1494_v4 }
 0x30b   : > { %950 = vst [vmem:[%s426_s28] sm:$0xf] %v949_v44 }
 0x30c   : > { %1288 = shalt.err (!%p1285_p7)
}
 0x30d   : > { %s1289_s20 = scalar_lea.hbm %s970_s13, 64  ;;  %s1293_s1 = scalar_lea.hbm %s1620_s10, 128 }
 0x30e   : > { %p1290_p9 = scmp.ne.s32.totalorder %s970_s13, %s1289_s20  ;;  %p1294_p12 = scmp.lt.s32.totalorder %s970_s13, %s1620_s10 }
 0x30f   : > { %p1295_p13 = scmp.lt.s32.totalorder %s1293_s1, %s1289_s20 }
 0x310   : > { %p1291_p10 = pnand %p1290_p9, %p1463_p4 }
 0x311   : > { %p1296_p0 = por %p1295_p13, %p1294_p12 }
 0x312   : > { %p1292_p11 = pneg %p1291_p10 }
 0x314   : > { %p1297_p1 = pnand %p1296_p0, %p1292_p11 }
 0x316   : > { %1300 = shalt.err (!%p1297_p1)
}
 0x317   : > { %1177 = dma.vmem_to_hbm [thread:$0]  (%p1463_p4), %s973_s12, 64, %s970_s13, %s953_s14  }
 0x318 PF: > { %p1188_p2 = scmp.ge.s32.totalorder %s1355_s22, 2  ;;  %s998_s3 = sand.u32 1, %s1335_s17  }
 0x319   : > { %s999_s16 = scalar_lea.sflag [#allocation3], %s998_s3 }
 0x31a   : > { %p1182_p3 = pnand %p1188_p2, %p1470_p8 }
 0x31c   : > { %p1183_p5 = pneg %p1182_p3 }
 0x31e   : > { %1326 = dma.done.wait (%p1183_p5), %s999_s16, 64  }
 0x31f   : > { %1328 = vsyncadd (%p1183_p5), %s999_s16, 4294967232  ;;  %s1008_s25 = scalar_lea.sflag [#allocation5], %s998_s3 }
 0x320   : > { %1330 = dma.done.wait (%p1183_p5), %s1008_s25, 64  }
 0x321   : > { %1332 = vsyncadd (%p1183_p5), %s1008_s25, 4294967232  ;;  %s28_s22 = sadd.s32 1, %s1355_s22   ;;  %s1638_s27 = sld [smem:[#allocation8_spill]] }
 0x322   : > { %p25_p6 = scmp.ge.s32.totalorder %s28_s22, 4   ;;  %s1639_s17 = smov %s1339_s18 }
 0x323   : > { %s1640_s18 = smov %s1343_s19  ;;  %s1641_s19 = smov %s1476_s30 }
 0x324   : > { %s1642_s20 = smov %s1351_s21  ;;  %27 = sbr.rel (!%p25_p6) target bundleno = 11 (0xb), region = 117 }
 0x327   : > { %s1643_s21 = smov %s1638_s27 }
 0x329   :  { %1013 = vsyncpa [#allocation3], 1 }
 0x32a   :  { %1015 = vsyncpa [#allocation3 + $0x1], 1 }
 0x32b   :  { %1016 = vsyncpa [#allocation5], 1 }
 0x32c   :  { %1018 = vsyncpa [#allocation5 + $0x1], 1 }

</bundles_post_ra>
